<compile_context>
chip_gen: v7x
topology: tpu7x:2x2x1
jax: 0.10.0
libtpu: 0.0.40
codegen_flags: <defaults>
</compile_context>

<pallas_src>
import jax
import jax.numpy as jnp
from jax.experimental import pallas as pl
from jax.experimental.pallas import tpu as pltpu


# ---------------------------------------------------------------------------
# Tiling plan
# ---------------------------------------------------------------------------
def _round_up(a, b):
    return -(-a // b) * b


def _plan_tiling(C, HW, itemsize, budget_bytes=24 << 20):
    """Returns (s, Cp, tile, n_l, Lp, HWp, vmem_limit_bytes).

    s   : sublane pack factor (channels < 8 get their spatial axis folded onto
          extra sublane rows).
    Cp  : packed channel count = C * s  (sublane axis of the kernel blocks).
    Lp  : packed, padded lane length per sample (= n_l * tile).
    HWp : padded spatial length per channel (= Lp * s).
    """
    s = max(1, 8 // max(C, 1))
    Cp = C * s
    lane_quantum = 128 * s
    hw_a = _round_up(max(HW, 1), lane_quantum)
    lp_a = hw_a // s                              # multiple of 128
    # VMEM budget: affine double-buffers (input + output) blocks.
    per_lane_bytes = 4 * Cp * itemsize
    tile_max = max(128, (budget_bytes // per_lane_bytes) // 128 * 128)
    n_l = -(-lp_a // tile_max)
    tile = _round_up(-(-lp_a // n_l), 128)
    Lp = n_l * tile
    HWp = Lp * s
    block_bytes = 4 * Cp * tile * itemsize        # double-buffered in + out
    vmem_limit = min(40 << 20, max(16 << 20, block_bytes + (4 << 20)))
    return s, Cp, tile, n_l, Lp, HWp, vmem_limit


def _pack(x, N, C, HW, HWp, Cp, Lp):
    x3 = x.reshape(N, C, HW)
    if HWp != HW:
        x3 = jnp.pad(x3, ((0, 0), (0, 0), (0, HWp - HW)))
    return x3.reshape(N, Cp, Lp)                  # contiguous reshape (free)


def _unpack(yp, N, C, H, W, HW, HWp):
    y3 = yp.reshape(N, C, HWp)
    if HWp != HW:
        y3 = y3[:, :, :HW]
    return y3.reshape(N, C, H, W)


# ---------------------------------------------------------------------------
# Kernel 1: per-(sample, packed-channel) sum of squares, accumulated over lane
# tiles into a VMEM scratch; output written once on the last reduction step.
# ---------------------------------------------------------------------------
def _sumsq_kernel(x_ref, out_ref, acc_ref):
    l = pl.program_id(1)

    @pl.when(l == 0)
    def _():
        acc_ref[...] = jnp.zeros_like(acc_ref)

    xv = x_ref[...].astype(jnp.float32)
    acc_ref[...] += jnp.sum(xv * xv, axis=-1, keepdims=True)   # (Cp, 1)

    @pl.when(l == pl.num_programs(1) - 1)
    def _():
        out_ref[...] = acc_ref[...]


def _channel_sumsq(xp, n_l, tile, vmem_limit):
    """xp: (N, Cp, Lp) -> per packed channel sum over N and Lp of x^2, (Cp,)."""
    N, Cp, Lp = xp.shape
    out = pl.pallas_call(
        _sumsq_kernel,
        out_shape=jax.ShapeDtypeStruct((N, Cp, 1), jnp.float32),
        grid=(N, n_l),
        in_specs=[pl.BlockSpec((None, Cp, tile), lambda n, l: (n, 0, l))],
        out_specs=pl.BlockSpec((None, Cp, 1), lambda n, l: (n, 0, 0)),
        scratch_shapes=[pltpu.VMEM((Cp, 1), jnp.float32)],
        compiler_params=pltpu.CompilerParams(
            dimension_semantics=("parallel", "arbitrary"),
            vmem_limit_bytes=vmem_limit),
    )(xp)
    return out[:, :, 0].sum(axis=0)               # (Cp,)


# ---------------------------------------------------------------------------
# Kernel 2: per-channel affine  y[n, c, :] = scale[c] * x[n, c, :] + bias[c]
# (scale folds together weight, r and 1/sqrt(var + eps)).
# ---------------------------------------------------------------------------
def _affine_kernel(scale_ref, bias_ref, x_ref, o_ref):
    o_ref[...] = (x_ref[...].astype(jnp.float32) * scale_ref[...]
                  + bias_ref[...]).astype(o_ref.dtype)


def _apply_affine(xp, scale_p, bias_p, n_l, tile, vmem_limit):
    N, Cp, Lp = xp.shape
    return pl.pallas_call(
        _affine_kernel,
        out_shape=jax.ShapeDtypeStruct((N, Cp, Lp), xp.dtype),
        grid=(N, n_l),
        in_specs=[pl.BlockSpec((Cp, 1), lambda n, l: (0, 0)),
                  pl.BlockSpec((Cp, 1), lambda n, l: (0, 0)),
                  pl.BlockSpec((None, Cp, tile), lambda n, l: (n, 0, l))],
        out_specs=pl.BlockSpec((None, Cp, tile), lambda n, l: (n, 0, l)),
        compiler_params=pltpu.CompilerParams(
            dimension_semantics=("parallel", "parallel"),
            vmem_limit_bytes=vmem_limit),
    )(scale_p.reshape(Cp, 1).astype(jnp.float32),
      bias_p.reshape(Cp, 1).astype(jnp.float32),
      xp)


# ---------------------------------------------------------------------------
# MABN2d forward (functional: returns y and the updated buffers/state).
# ---------------------------------------------------------------------------
def init_mabn2d_state(channels, B=2, real_B=32):
    assert real_B % B == 0
    buffer_size = real_B // B
    return {
        "weight": jnp.ones((channels,), jnp.float32),
        "bias": jnp.zeros((channels,), jnp.float32),
        "running_var": jnp.ones((channels,), jnp.float32),   # stored as (C,)
        "iters": jnp.zeros((), jnp.int32),
        "buffer_x2": jnp.zeros((buffer_size, channels), jnp.float32),
        "buffer_gz": jnp.zeros((buffer_size, channels), jnp.float32),
    }


def mabn2d_forward(x, state, *, eps=1e-5, momentum=0.98,
                   warmup_iters=100, training=True):
    N, C, H, W = x.shape
    HW = H * W
    itemsize = jnp.dtype(x.dtype).itemsize
    s, Cp, tile, n_l, Lp, HWp, vmem_limit = _plan_tiling(C, HW, itemsize)

    xp = _pack(x, N, C, HW, HWp, Cp, Lp)          # (N, Cp, Lp), no transpose

    weight = state["weight"]
    bias = state["bias"]
    running_var = state["running_var"]
    buffer_size = state["buffer_x2"].shape[0]

    def repeat_c(v):                              # (C,) -> (Cp,), rows channel-pure
        return jnp.repeat(v, s) if s > 1 else v

    if not training:
        scale = weight / jnp.sqrt(running_var + eps)
        yp = _apply_affine(xp, repeat_c(scale), repeat_c(bias),
                           n_l, tile, vmem_limit)
        return _unpack(yp, N, C, H, W, HW, HWp), state

    # ---- training path: replicates BatchNormFunction.forward ----
    iters = state["iters"] + 1                    # module increments first
    ssq = _channel_sumsq(xp, n_l, tile, vmem_limit)           # (Cp,)
    if s > 1:
        ssq = ssq.reshape(C, s).sum(axis=1)                   # (C,)
    x2 = ssq / jnp.float32(N * HW)                # zero-padding is exact

    buffer_x2 = state["buffer_x2"].at[iters % buffer_size].set(x2)
    use_x2 = jnp.logical_or(iters <= buffer_size, iters < warmup_iters)
    var = jnp.where(use_x2, x2, buffer_x2.mean(axis=0))
    r = jnp.sqrt(var + eps) / jnp.sqrt(running_var + eps)
    r = jnp.where(iters <= max(1000, warmup_iters),
                  jnp.float32(1.0), jnp.clip(r, 1.0 / 5.0, 5.0))
    running_var_new = momentum * running_var + (1.0 - momentum) * var

    # y = weight * r * x / sqrt(var + eps) + bias   (folded into scale/bias)
    scale = weight * r / jnp.sqrt(var + eps)
    yp = _apply_affine(xp, repeat_c(scale), repeat_c(bias),
                       n_l, tile, vmem_limit)
    y = _unpack(yp, N, C, H, W, HW, HWp)

    new_state = dict(state, iters=iters, buffer_x2=buffer_x2,
                     running_var=running_var_new)
    # TODO(synk): buffer_gz is only written in backward(); forward leaves it untouched.
    return y, new_state


# ---------------------------------------------------------------------------
# Pure-JAX reference for verification.
# ---------------------------------------------------------------------------
def _ref_training(x, state, eps, momentum, warmup_iters):
    N, C, H, W = x.shape
    iters = int(state["iters"]) + 1
    buffer_size = state["buffer_x2"].shape[0]
    x2 = jnp.mean(x * x, axis=(0, 2, 3))
    buf = state["buffer_x2"].at[iters % buffer_size].set(x2)
    var = x2 if (iters <= buffer_size or iters < warmup_iters) else buf.mean(0)
    z = x / jnp.sqrt(var + eps).reshape(1, C, 1, 1)
    r = jnp.sqrt(var + eps) / jnp.sqrt(state["running_var"] + eps)
    r = jnp.ones_like(r) if iters <= max(1000, warmup_iters) else jnp.clip(r, 0.2, 5.0)
    y = r.reshape(1, C, 1, 1) * z
    return (state["weight"].reshape(1, C, 1, 1) * y
            + state["bias"].reshape(1, C, 1, 1))


def _ref_eval(x, state, eps):
    C = x.shape[1]
    z = x / jnp.sqrt(state["running_var"] + eps).reshape(1, C, 1, 1)
    return (state["weight"].reshape(1, C, 1, 1) * z
            + state["bias"].reshape(1, C, 1, 1))


if __name__ == "__main__":
    key = jax.random.PRNGKey(0)
    N, C, H, W = 2, 4, 16, 16
    x = jax.random.normal(key, (N, C, H, W), dtype=jnp.float32)

    state = init_mabn2d_state(C, B=2, real_B=32)
    eps, momentum, warmup_iters = 1e-5, 0.98, 100

    # training forward
    y_train, new_state = mabn2d_forward(
        x, state, eps=eps, momentum=momentum,
        warmup_iters=warmup_iters, training=True)
    y_train = jax.block_until_ready(y_train)
    ref_train = _ref_training(x, state, eps, momentum, warmup_iters)
    assert jnp.allclose(y_train, ref_train, atol=1e-5, rtol=1e-5)

    # eval forward
    y_eval, _ = mabn2d_forward(
        x, new_state, eps=eps, momentum=momentum,
        warmup_iters=warmup_iters, training=False)
    y_eval = jax.block_until_ready(y_eval)
    ref_eval = _ref_eval(x, new_state, eps)
    assert jnp.allclose(y_eval, ref_eval, atol=1e-5, rtol=1e-5)

    print("KERNEL_OK")
</pallas_src>

<mosaic_0001>
module attributes {stable_mosaic.version = 11 : i64} {
  func.func @_sumsq_kernel(%arg0: i32, %arg1: i32, %arg2: memref<1x8x128xf32, #tpu.memory_space<vmem>>, %arg3: memref<1x8x1xf32, #tpu.memory_space<vmem>>, %arg4: memref<8x1xf32, #tpu.memory_space<vmem>>) attributes {dimension_semantics = [#tpu.dimension_semantics<parallel>, #tpu.dimension_semantics<arbitrary>], iteration_bounds = array<i64: 2, 1>, scalar_prefetch = 0 : i64, scratch_operands = 1 : i64, tpu.core_type = #tpu.core_type<tc>, window_params = [{transform_indices = @transform_0, window_bounds = array<i64: 1, 8, 128>}, {transform_indices = @transform_1, window_bounds = array<i64: 1, 8, 1>}]} {
    %c0_i32 = arith.constant 0 : i32
    %0 = arith.cmpi eq, %arg1, %c0_i32 : i32
    %1 = arith.extui %0 : i1 to i32
    %c0_i32_0 = arith.constant 0 : i32
    %2 = arith.cmpi ne, %1, %c0_i32_0 : i32
    scf.if %2 {
      %cst_9 = arith.constant 0.000000e+00 : f32
      %14 = vector.broadcast %cst_9 : f32 to vector<8x1xf32>
      %c0_10 = arith.constant 0 : index
      %c0_11 = arith.constant 0 : index
      %15 = vector.load %arg4[%c0_10, %c0_11] : memref<8x1xf32, #tpu.memory_space<vmem>>, vector<8x1xf32>
      tpu.vector_store %arg4[%c0_10, %c0_11], %14 {strides = array<i32>} : memref<8x1xf32, #tpu.memory_space<vmem>>, vector<8x1xf32>,
    } else {
    }
    %c0 = arith.constant 0 : index
    %c0_1 = arith.constant 0 : index
    %c0_2 = arith.constant 0 : index
    %3 = vector.load %arg2[%c0, %c0_1, %c0_2] : memref<1x8x128xf32, #tpu.memory_space<vmem>>, vector<1x8x128xf32>
    %4 = vector.shape_cast %3 : vector<1x8x128xf32> to vector<8x128xf32>
    %c0_3 = arith.constant 0 : index
    %c0_4 = arith.constant 0 : index
    %5 = vector.load %arg4[%c0_3, %c0_4] : memref<8x1xf32, #tpu.memory_space<vmem>>, vector<8x1xf32>
    %6 = arith.mulf %4, %4 : vector<8x128xf32>
    %cst = arith.constant dense<0.000000e+00> : vector<8xf32>
    %7 = vector.multi_reduction <add>, %6, %cst [1] : vector<8x128xf32> to vector<8xf32>
    %8 = vector.shape_cast %7 : vector<8xf32> to vector<8x1xf32>
    %9 = arith.addf %5, %8 : vector<8x1xf32>
    %c0_5 = arith.constant 0 : index
    %c0_6 = arith.constant 0 : index
    %10 = vector.load %arg4[%c0_5, %c0_6] : memref<8x1xf32, #tpu.memory_space<vmem>>, vector<8x1xf32>
    tpu.vector_store %arg4[%c0_5, %c0_6], %9 {strides = array<i32>} : memref<8x1xf32, #tpu.memory_space<vmem>>, vector<8x1xf32>,
    %c0_i32_7 = arith.constant 0 : i32
    %11 = arith.cmpi eq, %arg1, %c0_i32_7 : i32
    %12 = arith.extui %11 : i1 to i32
    %c0_i32_8 = arith.constant 0 : i32
    %13 = arith.cmpi ne, %12, %c0_i32_8 : i32
    scf.if %13 {
      %c0_9 = arith.constant 0 : index
      %c0_10 = arith.constant 0 : index
      %14 = vector.load %arg4[%c0_9, %c0_10] : memref<8x1xf32, #tpu.memory_space<vmem>>, vector<8x1xf32>
      %c0_11 = arith.constant 0 : index
      %c0_12 = arith.constant 0 : index
      %c0_13 = arith.constant 0 : index
      %15 = vector.load %arg3[%c0_11, %c0_12, %c0_13] : memref<1x8x1xf32, #tpu.memory_space<vmem>>, vector<1x8x1xf32>
      %16 = vector.shape_cast %15 : vector<1x8x1xf32> to vector<8x1xf32>
      %17 = vector.shape_cast %14 : vector<8x1xf32> to vector<1x8x1xf32>
      tpu.vector_store %arg3[%c0_11, %c0_12, %c0_13], %17 {strides = array<i32>} : memref<1x8x1xf32, #tpu.memory_space<vmem>>, vector<1x8x1xf32>,
    } else {
    }
    return
  }
  func.func @transform_0(%arg0: i32, %arg1: i32) -> (i32, i32, i32) {
    %c0_i32 = arith.constant 0 : i32
    %c0_i32_0 = arith.constant 0 : i32
    return %arg0, %c0_i32, %arg1 : i32, i32, i32
  }
  func.func @transform_1(%arg0: i32, %arg1: i32) -> (i32, i32, i32) {
    %c0_i32 = arith.constant 0 : i32
    %c0_i32_0 = arith.constant 0 : i32
    %c0_i32_1 = arith.constant 0 : i32
    return %arg0, %c0_i32, %c0_i32_0 : i32, i32, i32
  }
}

</mosaic_0001>

<bundles_post_ra>
// kernel: tpu_custom_call.1
= control target key start
LH: loop header
LB: loop body
LE: loop exit
PB: predicated region body
PF: predicated region fallthrough
CT: control target
= control target key end

     0   :  { %6 = vsyncpa [#allocation4], 0  ;;  %s526_s0 = inlined_call_operand.hbm [shape: f32[2,8,128], index: 0, kind: input, shape index: {}]   ;;  %s527_s1 = inlined_call_operand.vmem [shape: f32[2,8,1], index: 1, kind: output, shape index: {}]  }
   0x1   :  { %8 = vsyncpa [#allocation4 + $0x1], 0  ;;  %s401_s6 = smov 0   ;;  %s403_s7 = smov 0  }
   0x2   :  { %s405_s8 = smov 0   ;;  %s407_s9 = smov 0  }
   0x3   :  { %s409_s10 = smov 0   ;;  %s411_s11 = smov 0  }
   0x4 LB: > { %s240_s12 = sadd.s32 4294967295, %s387_s11   ;;  %s26_s13 = sadd.s32 1, %s383_s10  ;;  %s387_s11 = sphi %s411_s11, %s14_s11   ;;  %s383_s10 = sphi %s409_s10, %s537_s10   ;;  %s379_s9 = sphi %s407_s9, %s536_s9   ;;  %s375_s8 = sphi %s405_s8, %s535_s8   ;;  %s371_s7 = sphi %s403_s7, %s534_s7   ;;  %s367_s6 = sphi %s401_s6, %s533_s6  }
   0x5   : > { %p28_p0 = scmp.ge.s32.totalorder %s26_s13, 2  ;;  %s35_s14 = sadd.s32 1, %s375_s8 }
   0x6   : > { %p42_p1 = scmp.ne.s32.totalorder %s375_s8, %s371_s7  ;;  %p43_p2 = scmp.eq.s32.totalorder %s387_s11, 0 }
   0x7   : > { %s539_s13 = smov (%p28_p0, %s26_s13), 0  ;;  %p48_p4 = scmp.ne.s32.totalorder %s371_s7, %s367_s6 }
   0x8   : > { %p437_p3 = por %p43_p2, %p42_p1  ;;  %s30_s16 = ssub.s32 %s383_s10, %s539_s13 }
   0x9   : > { %p49_p5 = scmp.eq.s32.totalorder %s240_s12, 0  ;;  %p33_p6 = scmp.eq.s32.totalorder %s30_s16, 0 }
   0xa   : > { %p257_p8 = scmp.lt.s32.totalorder %s387_s11, 2  ;;  %s98_s19 = sand.u32 1, %s375_s8  }
   0xb   : > { %p444_p7 = por %p49_p5, %p48_p4  ;;  %s245_s20 = sshll.u32 %s383_s10, 7 }
   0xc   : > { %s450_s18 = scalar_select %p33_p6, %s375_s8, %s35_s14  }
   0xd   : > { %s244_s21 = sshll.u32 %s98_s19, 3  ;;  %s457_s24 = scalar_lea.hbm %s526_s0, %s245_s20 }
   0xe   : > { %s102_s25 = scalar_lea.vmem [#allocation3], %s244_s21  ;;  %p461_p9 = pnand %p257_p8, %p437_p3 }
   0xf   : > { %s110_s26 = sshll.u32 %s102_s25, 4  ;;  %s99_s28 = scalar_lea.sflag [#allocation4], %s98_s19  ;;  %s465_s26 = int_to_ptr.vmem [resolvable:$true] %s110_s26 }
  0x10   : > { %s307_s29 = scalar_lea.hbm %s457_s24, 128  ;;  %p309_p13 = pneg %p461_p9 }
  0x11   : > { %p308_p12 = scmp.ne.s32.totalorder %s457_s24, %s307_s29  ;;  %s312_s3 = scalar_lea.hbm %s526_s0, 256 }
  0x12   : > { %p313_p2 = scmp.lt.u32.totalorder %s457_s24, %s526_s0  ;;  %p314_p3 = scmp.lt.u32.totalorder %s312_s3, %s307_s29 }
  0x13   : > { %p310_p0 = pnand %p309_p13, %p308_p12  ;;  %p316_p5 = scmp.lt.u32.totalorder %s307_s29, %s457_s24 }
  0x14   : > { %p315_p4 = por %p314_p3, %p313_p2 }
  0x15   : > { %p311_p1 = pneg %p310_p0 }
  0x16   : > { %p317_p6 = por %p316_p5, %p315_p4 }
  0x18   : > { %p318_p8 = pnand %p317_p6, %p311_p1 }
  0x1a   : > { %321 = shalt.err (!%p318_p8)
}
  0x1b   : > { %s322_s6 = scalar_lea.vmem %s465_s26, 128  ;;  %s389_s12 = smov [#allocation3]  }
  0x1c   : > { %p323_p12 = scmp.ne.s32.totalorder %s465_s26, %s322_s6  ;;  %s327_s14 = sshll.u32 %s389_s12, 4  ;;  %s328_s14 = int_to_ptr.vmem [resolvable:$false] %s327_s14 }
  0x1d   : > { %s329_s15 = scalar_lea.vmem %s328_s14, 256  ;;  %p330_p11 = scmp.lt.s32.totalorder %s465_s26, %s328_s14 }
  0x1e   : > { %p325_p0 = pnand %p323_p12, %p309_p13  ;;  %p331_p2 = scmp.lt.s32.totalorder %s329_s15, %s322_s6 }
  0x20   : > { %p326_p10 = pneg %p325_p0  ;;  %p332_p3 = por %p331_p2, %p330_p11 }
  0x22   : > { %p333_p4 = pnand %p332_p3, %p326_p10 }
  0x24   : > { %336 = shalt.err (!%p333_p4)
}
  0x25   : > { %256 = dma.hbm_to_vmem [thread:$0]  (!%p461_p9), %s457_s24, 128, %s465_s26, %s99_s28  }
  0x26   : > { %p531_p1 = scmp.lt.s32.totalorder %s387_s11, 3  ;;  %p532_p5 = scmp.ge.s32.totalorder %s387_s11, 1 }
  0x28   : > { %p116_p13 = pnand %p532_p5, %p531_p1 }
  0x29   : > { %s121_s16 = sand.u32 (!%p116_p13), 1, %s371_s7  }
  0x2a   : > { %119 = sbr.rel (%p116_p13) target bundleno = 206 (0xce), region = 24  ;;  %s247_s19 = sshll.u32 (!%p116_p13), %s121_s16, 3 }
  0x2b   : > { %s122_s20 = scalar_lea.sflag (!%p116_p13), [#allocation4], %s121_s16  ;;  %s125_s21 = scalar_lea.vmem (!%p116_p13), [#allocation3], %s247_s19 }
  0x31   : > { %362 = dma.done.wait (%p444_p7), %s122_s20, 128  }
  0x32   : > { %364 = vsyncadd (%p444_p7), %s122_s20, 4294967168  ;;  %vm151_vm0 = vcmask 7168   ;;  %v390_v0 = vmov 0.0   ;;  %v153_v1 = vld [vmem:[%s125_s21] sm:$0xff]  ;;  %p143_p9 = scmp.lt.s32.totalorder %s379_s9, 1 }
  0x33   : > { %152 = vst.msk [vmem:[#allocation2] sm:$0xff] %vm151_vm0, %v390_v0  ;;  %v155_v2 = vmul.f32 %v153_v1, %v153_v1 }
  0x34   : > { %s541_s9 = smov (!%p143_p9, %s379_s9), 1 }
  0x35   : > { %156 = vadd.xlane.f32.xlu0 %v155_v2  ;;  %s248_s22 = sshll.u32 %s541_s9, 3 }
  0x36   : > { %s146_s17 = scalar_lea.vmem %s527_s1, %s248_s22 }
  0x3a   : > { %v154_v3 = vld [vmem:[#allocation2] sm:$0xff] }
  0xc2   : > { %v157_v4 = vpop.xlane.xlu0 %156 }
  0xc3   : > { %v158_v5 = vadd.f32 %v157_v4, %v154_v3 }
  0xc5   : > { %160 = vst.msk [vmem:[#allocation2] sm:$0xff] %vm151_vm0, %v158_v5 }
  0xcc   : > { %v164_v6 = vld [vmem:[#allocation2] sm:$0xff] }
  0xcd   : > { %165 = vst.msk [vmem:[%s146_s17] sm:$0xff] %vm151_vm0, %v164_v6 }
  0xce PF: > { %s14_s11 = sadd.s32 1, %s387_s11   ;;  %s533_s6 = smov %s371_s7 }
  0xcf   : > { %p11_p7 = scmp.ge.s32.totalorder %s14_s11, 4   ;;  %s534_s7 = smov %s375_s8 }
  0xd0   : > { %s535_s8 = smov %s450_s18  ;;  %s536_s9 = smov %s383_s10 }
  0xd1   : > { %s537_s10 = smov %s539_s13  ;;  %13 = sbr.rel (!%p11_p7) target bundleno = 4 (0x4), region = 72 }
  0xd8   :  { %185 = vsyncpa [#allocation4], 1 }
  0xd9   :  { %187 = vsyncpa [#allocation4 + $0x1], 1 }

</bundles_post_ra>
